<compile_context>
chip_gen: v6e
topology: v6e:2x2x1
jax: 0.10.0
libtpu: 0.0.40
codegen_flags: <defaults>
</compile_context>

<pallas_src>
import jax
import jax.numpy as jnp
from jax.experimental import pallas as pl
from jax.experimental.pallas import tpu as pltpu

IN_F = 13
H1, H2, H3 = 32, 64, 32
OUT_F = 12
PAD = 128  # lane-dense width for hidden layers


def _round_up(n, m):
    return ((n + m - 1) // m) * m


# ---------------------------------------------------------------------------
# Kernel: one batch tile of the full MLP (4 matmuls + bias + ReLU).
# Hidden widths padded to 128 lanes -> lane-dense activations; only the 12
# real output columns are stored back to HBM.
# ---------------------------------------------------------------------------
def mlp_kernel(x_ref, w1_ref, b1_ref, w2_ref, b2_ref, w3_ref, b3_ref,
               w4_ref, b4_ref, o_ref):
    # x arrives f32; cast to bf16 in-kernel (kernel is HBM/MXU bound, cast is free).
    x = x_ref[...].astype(jnp.bfloat16)                                   # (TM, 13)

    h1 = jnp.dot(x, w1_ref[...], preferred_element_type=jnp.float32) + b1_ref[...]
    h1 = jnp.maximum(h1, 0.0).astype(jnp.bfloat16)                        # (TM, 128)

    h2 = jnp.dot(h1, w2_ref[...], preferred_element_type=jnp.float32) + b2_ref[...]
    h2 = jnp.maximum(h2, 0.0).astype(jnp.bfloat16)                        # (TM, 128)

    h3 = jnp.dot(h2, w3_ref[...], preferred_element_type=jnp.float32) + b3_ref[...]
    h3 = jnp.maximum(h3, 0.0).astype(jnp.bfloat16)                        # (TM, 128)

    out = jnp.dot(h3, w4_ref[...], preferred_element_type=jnp.float32)    # (TM, 128)
    # Narrow store: only the 12 real output columns go back to HBM.
    o_ref[...] = out[:, :OUT_F] + b4_ref[...]                             # (TM, 12)


# ---------------------------------------------------------------------------
# Parameter prep: zero-pad hidden dims to 128 lanes, cast weights to bf16.
# Done once, outside the kernel.
# ---------------------------------------------------------------------------
def prepare_params(params):
    def pad_w(w, rows, cols):
        out = jnp.zeros((rows, cols), jnp.float32)
        out = out.at[: w.shape[0], : w.shape[1]].set(w)
        return out.astype(jnp.bfloat16)

    def pad_b(b, cols):
        out = jnp.zeros((1, cols), jnp.float32)
        return out.at[:, : b.shape[1]].set(b)

    return dict(
        w1=pad_w(params["w1"], IN_F, PAD), b1=pad_b(params["b1"], PAD),
        w2=pad_w(params["w2"], PAD, PAD),  b2=pad_b(params["b2"], PAD),
        w3=pad_w(params["w3"], PAD, PAD),  b3=pad_b(params["b3"], PAD),
        w4=pad_w(params["w4"], PAD, PAD),  b4=params["b4"].astype(jnp.float32),  # (1, 12)
    )


# ---------------------------------------------------------------------------
# Wrapper: batch-tiled pallas_call.
# ---------------------------------------------------------------------------
def mlp_forward(x, padded_params, *, tm=4096):
    """x: (B, 13) float32.  padded_params: output of prepare_params()."""
    B = x.shape[0]
    x = x.astype(jnp.float32)

    # Rows per tile: multiple of 8, no larger than the (rounded-up) batch.
    tm = max(8, min(_round_up(tm, 8), _round_up(B, 8)))
    # v7x has 2 TensorCores; keep >=2 grid steps (when the batch allows it) so
    # the "parallel" batch axis actually shards across both cores.
    if B > 8:
        tm = max(8, min(tm, _round_up(pl.cdiv(B, 2), 8)))

    B_pad = _round_up(B, tm)
    if B_pad != B:
        x = jnp.pad(x, ((0, B_pad - B), (0, 0)))

    p = padded_params
    grid = (B_pad // tm,)

    x_spec = pl.BlockSpec((tm, IN_F), lambda i: (i, 0))
    const_spec = lambda a: pl.BlockSpec(a.shape, lambda i: (0, 0))
    out_spec = pl.BlockSpec((tm, OUT_F), lambda i: (i, 0))

    weight_bytes = sum(int(p[k].size) * p[k].dtype.itemsize for k in p)
    cost = pl.CostEstimate(
        flops=2 * B_pad * PAD * (IN_F + 3 * PAD),
        transcendentals=0,
        bytes_accessed=B_pad * (IN_F + OUT_F) * 4 + weight_bytes,
    )

    # tm=2048-4096 fits comfortably in the 32 MiB scoped default; only very
    # large tiles need more headroom.
    vmem_limit = (64 if tm >= 8192 else 32) * 1024 * 1024

    out = pl.pallas_call(
        mlp_kernel,
        out_shape=jax.ShapeDtypeStruct((B_pad, OUT_F), jnp.float32),
        grid=grid,
        in_specs=[
            x_spec,
            const_spec(p["w1"]), const_spec(p["b1"]),
            const_spec(p["w2"]), const_spec(p["b2"]),
            const_spec(p["w3"]), const_spec(p["b3"]),
            const_spec(p["w4"]), const_spec(p["b4"]),
        ],
        out_specs=out_spec,
        compiler_params=pltpu.CompilerParams(
            dimension_semantics=("parallel",),     # megacore sharding on v7x
            vmem_limit_bytes=vmem_limit,
        ),
        cost_estimate=cost,
    )(x, p["w1"], p["b1"], p["w2"], p["b2"], p["w3"], p["b3"], p["w4"], p["b4"])

    return out if B_pad == B else out[:B]


# ---------------------------------------------------------------------------
# Init + reference
# ---------------------------------------------------------------------------
def init_params(key):
    """Deterministic init mirroring torch.nn.Linear defaults: U(-1/sqrt(fan_in), +)."""
    dims = [(IN_F, H1), (H1, H2), (H2, H3), (H3, OUT_F)]
    params = {}
    for i, (fan_in, fan_out) in enumerate(dims, start=1):
        key, kw, kb = jax.random.split(key, 3)
        bound = 1.0 / jnp.sqrt(float(fan_in))
        params[f"w{i}"] = jax.random.uniform(
            kw, (fan_in, fan_out), jnp.float32, -bound, bound)
        params[f"b{i}"] = jax.random.uniform(
            kb, (1, fan_out), jnp.float32, -bound, bound)
    return params


def mlp_reference_bf16(x, params):
    """Pure-JAX reference mirroring the kernel numerics: bf16 operands into
    each matmul, f32 accumulate, bf16 activations, f32 output."""
    h = x.astype(jnp.bfloat16)
    for i in range(1, 4):
        w = params[f"w{i}"].astype(jnp.bfloat16)
        h = jnp.dot(h, w, preferred_element_type=jnp.float32) + params[f"b{i}"]
        h = jnp.maximum(h, 0.0).astype(jnp.bfloat16)
    w = params["w4"].astype(jnp.bfloat16)
    return jnp.dot(h, w, preferred_element_type=jnp.float32) + params["b4"]


if __name__ == "__main__":
    key = jax.random.PRNGKey(0)
    key, kx, kx2 = jax.random.split(key, 3)

    params = init_params(key)
    padded = prepare_params(params)

    # Small batch (single grid step).
    B = 8
    x = jax.random.normal(kx, (B, IN_F), jnp.float32)
    out = jax.block_until_ready(mlp_forward(x, padded))
    ref = mlp_reference_bf16(x, params)
    assert out.shape == (B, OUT_F), out.shape
    assert jnp.allclose(out, ref, atol=1e-3, rtol=1e-3), "mismatch vs reference (small batch)"

    # Larger, ragged batch: exercises multi-tile grid (>=2 steps), row padding,
    # and the narrow (tm, 12) output store.
    B2 = 1050
    x2 = jax.random.normal(kx2, (B2, IN_F), jnp.float32)
    out2 = jax.block_until_ready(mlp_forward(x2, padded))
    ref2 = mlp_reference_bf16(x2, params)
    assert out2.shape == (B2, OUT_F), out2.shape
    assert jnp.allclose(out2, ref2, atol=1e-3, rtol=1e-3), "mismatch vs reference (tiled batch)"

    print("KERNEL_OK")
</pallas_src>

<mosaic_0001>
module attributes {stable_mosaic.version = 11 : i64} {
  func.func @mlp_kernel(%arg0: i32, %arg1: memref<8x13xf32, #tpu.memory_space<vmem>>, %arg2: memref<13x128xbf16, #tpu.memory_space<vmem>>, %arg3: memref<1x128xf32, #tpu.memory_space<vmem>>, %arg4: memref<128x128xbf16, #tpu.memory_space<vmem>>, %arg5: memref<1x128xf32, #tpu.memory_space<vmem>>, %arg6: memref<128x128xbf16, #tpu.memory_space<vmem>>, %arg7: memref<1x128xf32, #tpu.memory_space<vmem>>, %arg8: memref<128x128xbf16, #tpu.memory_space<vmem>>, %arg9: memref<1x12xf32, #tpu.memory_space<vmem>>, %arg10: memref<8x12xf32, #tpu.memory_space<vmem>>) attributes {dimension_semantics = [#tpu.dimension_semantics<parallel>], iteration_bounds = array<i64: 1>, scalar_prefetch = 0 : i64, scratch_operands = 0 : i64, tpu.core_type = #tpu.core_type<tc>, window_params = [{transform_indices = @transform_0, window_bounds = array<i64: 8, 13>}, {pipeline_mode = #tpu.pipeline_mode<synchronous>, transform_indices = @transform_1, window_bounds = array<i64: 13, 128>}, {pipeline_mode = #tpu.pipeline_mode<synchronous>, transform_indices = @transform_2, window_bounds = array<i64: 1, 128>}, {pipeline_mode = #tpu.pipeline_mode<synchronous>, transform_indices = @transform_3, window_bounds = array<i64: 128, 128>}, {pipeline_mode = #tpu.pipeline_mode<synchronous>, transform_indices = @transform_4, window_bounds = array<i64: 1, 128>}, {pipeline_mode = #tpu.pipeline_mode<synchronous>, transform_indices = @transform_5, window_bounds = array<i64: 128, 128>}, {pipeline_mode = #tpu.pipeline_mode<synchronous>, transform_indices = @transform_6, window_bounds = array<i64: 1, 128>}, {pipeline_mode = #tpu.pipeline_mode<synchronous>, transform_indices = @transform_7, window_bounds = array<i64: 128, 128>}, {pipeline_mode = #tpu.pipeline_mode<synchronous>, transform_indices = @transform_8, window_bounds = array<i64: 1, 12>}, {transform_indices = @transform_9, window_bounds = array<i64: 8, 12>}]} {
    %c0 = arith.constant 0 : index
    %c0_0 = arith.constant 0 : index
    %0 = vector.load %arg1[%c0, %c0_0] : memref<8x13xf32, #tpu.memory_space<vmem>>, vector<8x13xf32>
    %1 = arith.truncf %0 : vector<8x13xf32> to vector<8x13xbf16>
    %c0_1 = arith.constant 0 : index
    %c0_2 = arith.constant 0 : index
    %2 = vector.load %arg2[%c0_1, %c0_2] : memref<13x128xbf16, #tpu.memory_space<vmem>>, vector<13x128xbf16>
    %cst = arith.constant dense<0.000000e+00> : vector<8x128xf32>
    %3 = tpu.matmul %1, %2, %cst {dimension_numbers = #tpu.dot_dimension_numbers<[1], [0], [0], [1], [0, 0, 1, 1], [], []>} : vector<8x13xbf16>, vector<13x128xbf16>, vector<8x128xf32> -> vector<8x128xf32>
    %c0_3 = arith.constant 0 : index
    %c0_4 = arith.constant 0 : index
    %4 = vector.load %arg3[%c0_3, %c0_4] : memref<1x128xf32, #tpu.memory_space<vmem>>, vector<1x128xf32>
    %5 = vector.broadcast %4 : vector<1x128xf32> to vector<8x128xf32>
    %6 = arith.addf %3, %5 : vector<8x128xf32>
    %cst_5 = arith.constant 0.000000e+00 : f32
    %7 = vector.broadcast %cst_5 : f32 to vector<8x128xf32>
    %8 = arith.maximumf %6, %7 : vector<8x128xf32>
    %9 = arith.truncf %8 : vector<8x128xf32> to vector<8x128xbf16>
    %c0_6 = arith.constant 0 : index
    %c0_7 = arith.constant 0 : index
    %10 = vector.load %arg4[%c0_6, %c0_7] : memref<128x128xbf16, #tpu.memory_space<vmem>>, vector<128x128xbf16>
    %cst_8 = arith.constant dense<0.000000e+00> : vector<8x128xf32>
    %11 = tpu.matmul %9, %10, %cst_8 {dimension_numbers = #tpu.dot_dimension_numbers<[1], [0], [0], [1], [0, 0, 1, 1], [], []>} : vector<8x128xbf16>, vector<128x128xbf16>, vector<8x128xf32> -> vector<8x128xf32>
    %c0_9 = arith.constant 0 : index
    %c0_10 = arith.constant 0 : index
    %12 = vector.load %arg5[%c0_9, %c0_10] : memref<1x128xf32, #tpu.memory_space<vmem>>, vector<1x128xf32>
    %13 = vector.broadcast %12 : vector<1x128xf32> to vector<8x128xf32>
    %14 = arith.addf %11, %13 : vector<8x128xf32>
    %cst_11 = arith.constant 0.000000e+00 : f32
    %15 = vector.broadcast %cst_11 : f32 to vector<8x128xf32>
    %16 = arith.maximumf %14, %15 : vector<8x128xf32>
    %17 = arith.truncf %16 : vector<8x128xf32> to vector<8x128xbf16>
    %c0_12 = arith.constant 0 : index
    %c0_13 = arith.constant 0 : index
    %18 = vector.load %arg6[%c0_12, %c0_13] : memref<128x128xbf16, #tpu.memory_space<vmem>>, vector<128x128xbf16>
    %cst_14 = arith.constant dense<0.000000e+00> : vector<8x128xf32>
    %19 = tpu.matmul %17, %18, %cst_14 {dimension_numbers = #tpu.dot_dimension_numbers<[1], [0], [0], [1], [0, 0, 1, 1], [], []>} : vector<8x128xbf16>, vector<128x128xbf16>, vector<8x128xf32> -> vector<8x128xf32>
    %c0_15 = arith.constant 0 : index
    %c0_16 = arith.constant 0 : index
    %20 = vector.load %arg7[%c0_15, %c0_16] : memref<1x128xf32, #tpu.memory_space<vmem>>, vector<1x128xf32>
    %21 = vector.broadcast %20 : vector<1x128xf32> to vector<8x128xf32>
    %22 = arith.addf %19, %21 : vector<8x128xf32>
    %cst_17 = arith.constant 0.000000e+00 : f32
    %23 = vector.broadcast %cst_17 : f32 to vector<8x128xf32>
    %24 = arith.maximumf %22, %23 : vector<8x128xf32>
    %25 = arith.truncf %24 : vector<8x128xf32> to vector<8x128xbf16>
    %c0_18 = arith.constant 0 : index
    %c0_19 = arith.constant 0 : index
    %26 = vector.load %arg8[%c0_18, %c0_19] : memref<128x128xbf16, #tpu.memory_space<vmem>>, vector<128x128xbf16>
    %cst_20 = arith.constant dense<0.000000e+00> : vector<8x128xf32>
    %27 = tpu.matmul %25, %26, %cst_20 {dimension_numbers = #tpu.dot_dimension_numbers<[1], [0], [0], [1], [0, 0, 1, 1], [], []>} : vector<8x128xbf16>, vector<128x128xbf16>, vector<8x128xf32> -> vector<8x128xf32>
    %28 = vector.extract_strided_slice %27 {offsets = [0, 0], sizes = [8, 12], strides = [1, 1]} : vector<8x128xf32> to vector<8x12xf32>
    %c0_21 = arith.constant 0 : index
    %c0_22 = arith.constant 0 : index
    %29 = vector.load %arg9[%c0_21, %c0_22] : memref<1x12xf32, #tpu.memory_space<vmem>>, vector<1x12xf32>
    %30 = vector.broadcast %29 : vector<1x12xf32> to vector<8x12xf32>
    %31 = arith.addf %28, %30 : vector<8x12xf32>
    %c0_23 = arith.constant 0 : index
    %c0_24 = arith.constant 0 : index
    %32 = vector.load %arg10[%c0_23, %c0_24] : memref<8x12xf32, #tpu.memory_space<vmem>>, vector<8x12xf32>
    tpu.vector_store %arg10[%c0_23, %c0_24], %31 {strides = array<i32>} : memref<8x12xf32, #tpu.memory_space<vmem>>, vector<8x12xf32>,
    return
  }
  func.func @transform_0(%arg0: i32) -> (i32, i32) {
    %c0_i32 = arith.constant 0 : i32
    %c0_i32_0 = arith.constant 0 : i32
    return %arg0, %c0_i32 : i32, i32
  }
  func.func @transform_1(%arg0: i32) -> (i32, i32) {
    %c0_i32 = arith.constant 0 : i32
    %c0_i32_0 = arith.constant 0 : i32
    %c0_i32_1 = arith.constant 0 : i32
    return %c0_i32, %c0_i32_0 : i32, i32
  }
  func.func @transform_2(%arg0: i32) -> (i32, i32) {
    %c0_i32 = arith.constant 0 : i32
    %c0_i32_0 = arith.constant 0 : i32
    %c0_i32_1 = arith.constant 0 : i32
    return %c0_i32, %c0_i32_0 : i32, i32
  }
  func.func @transform_3(%arg0: i32) -> (i32, i32) {
    %c0_i32 = arith.constant 0 : i32
    %c0_i32_0 = arith.constant 0 : i32
    %c0_i32_1 = arith.constant 0 : i32
    return %c0_i32, %c0_i32_0 : i32, i32
  }
  func.func @transform_4(%arg0: i32) -> (i32, i32) {
    %c0_i32 = arith.constant 0 : i32
    %c0_i32_0 = arith.constant 0 : i32
    %c0_i32_1 = arith.constant 0 : i32
    return %c0_i32, %c0_i32_0 : i32, i32
  }
  func.func @transform_5(%arg0: i32) -> (i32, i32) {
    %c0_i32 = arith.constant 0 : i32
    %c0_i32_0 = arith.constant 0 : i32
    %c0_i32_1 = arith.constant 0 : i32
    return %c0_i32, %c0_i32_0 : i32, i32
  }
  func.func @transform_6(%arg0: i32) -> (i32, i32) {
    %c0_i32 = arith.constant 0 : i32
    %c0_i32_0 = arith.constant 0 : i32
    %c0_i32_1 = arith.constant 0 : i32
    return %c0_i32, %c0_i32_0 : i32, i32
  }
  func.func @transform_7(%arg0: i32) -> (i32, i32) {
    %c0_i32 = arith.constant 0 : i32
    %c0_i32_0 = arith.constant 0 : i32
    %c0_i32_1 = arith.constant 0 : i32
    return %c0_i32, %c0_i32_0 : i32, i32
  }
  func.func @transform_8(%arg0: i32) -> (i32, i32) {
    %c0_i32 = arith.constant 0 : i32
    %c0_i32_0 = arith.constant 0 : i32
    %c0_i32_1 = arith.constant 0 : i32
    return %c0_i32, %c0_i32_0 : i32, i32
  }
  func.func @transform_9(%arg0: i32) -> (i32, i32) {
    %c0_i32 = arith.constant 0 : i32
    %c0_i32_0 = arith.constant 0 : i32
    return %arg0, %c0_i32 : i32, i32
  }
}

</mosaic_0001>

<bundles_post_ra>
// kernel: tpu_custom_call.1
= control target key start
LH: loop header
LB: loop body
LE: loop exit
PB: predicated region body
PF: predicated region fallthrough
CT: control target
= control target key end

     0   :  { %14 = vsyncpa [#allocation3], 0  ;;  %s951_s0 = inlined_call_operand.hbm [shape: f32[8,13], index: 0, kind: input, shape index: {}]   ;;  %s952_s1 = inlined_call_operand.hbm [shape: bf16[13,128], index: 1, kind: input, shape index: {}]   ;;  %s953_s2 = inlined_call_operand.vmem [shape: f32[1,128], index: 2, kind: input, shape index: {}]   ;;  %s954_s3 = inlined_call_operand.hbm [shape: bf16[128,128], index: 3, kind: input, shape index: {}]   ;;  %s955_s4 = inlined_call_operand.vmem [shape: f32[1,128], index: 4, kind: input, shape index: {}]   ;;  %s956_s5 = inlined_call_operand.hbm [shape: bf16[128,128], index: 5, kind: input, shape index: {}]   ;;  %s957_s6 = inlined_call_operand.vmem [shape: f32[1,128], index: 6, kind: input, shape index: {}]   ;;  %s958_s7 = inlined_call_operand.hbm [shape: bf16[128,128], index: 7, kind: input, shape index: {}]   ;;  %s959_s8 = inlined_call_operand.vmem [shape: f32[1,12], index: 8, kind: input, shape index: {}]   ;;  %s960_s9 = inlined_call_operand.hbm [shape: f32[8,12], index: 9, kind: output, shape index: {}]  }
   0x1   :  { %15 = vsyncpa [#allocation6], 0 }
   0x2   :  { %16 = vsyncpa [#allocation9], 0 }
   0x3   :  { %17 = vsyncpa [#allocation4], 0  ;;  %s815_s30 = smov [#allocation5]  }
   0x4   :  { %s33_s10 = sshll.u32 %s815_s30, 4  ;;  %s34_s10 = int_to_ptr.vmem [resolvable:$true] %s33_s10 }
   0x5   :  { %s695_s11 = scalar_lea.vmem %s34_s10, 128  ;;  %p700_p1 = scmp.lt.s32.totalorder %s34_s10, %s34_s10 }
   0x6   :  { %p696_p0 = scmp.ne.s32.totalorder %s34_s10, %s695_s11  ;;  %p701_p2 = scmp.lt.s32.totalorder %s695_s11, %s695_s11 }
   0x8   :  { %p702_p3 = por %p701_p2, %p700_p1 }
   0xa   :  { %p703_p4 = pnand %p702_p3, %p696_p0 }
   0xc   :  { %706 = shalt.err (!%p703_p4)
}
   0xd   :  { %s816_s12 = smov 64   ;;  %s817_s13 = smov 4  }
   0xe   :  { %39 = dma.hbm_to_vmem [thread:$0]  %s952_s1, 128, %s34_s10, [#allocation6], %s816_s12, %s816_s12, %s817_s13  }
   0xf   :  { %s818_s16 = smov [#allocation8]   ;;  %s819_s18 = smov [#allocation2]  }
  0x10   :  { %s61_s17 = sshll.u32 %s818_s16, 4  ;;  %s24_s19 = sshll.u32 %s819_s18, 4  ;;  %s62_s17 = int_to_ptr.vmem [resolvable:$true] %s61_s17  ;;  %s25_s19 = int_to_ptr.vmem [resolvable:$true] %s24_s19 }
  0x11   :  { %s715_s20 = scalar_lea.vmem %s62_s17, 1024  ;;  %p720_p6 = scmp.lt.s32.totalorder %s62_s17, %s62_s17 }
  0x12   :  { %p716_p5 = scmp.ne.s32.totalorder %s62_s17, %s715_s20  ;;  %p721_p7 = scmp.lt.s32.totalorder %s715_s20, %s715_s20 }
  0x14   :  { %p722_p8 = por %p721_p7, %p720_p6 }
  0x16   :  { %p723_p9 = pnand %p722_p8, %p716_p5 }
  0x18   :  { %726 = shalt.err (!%p723_p9)
}
  0x19   :  { %67 = dma.hbm_to_vmem [thread:$0]  %s956_s5, 1024, %s62_s17, [#allocation9], %s816_s12, %s816_s12, %s817_s13  }
  0x1a   :  { %s735_s1 = scalar_lea.vmem %s25_s19, 128  ;;  %p740_p11 = scmp.lt.s32.totalorder %s25_s19, %s25_s19 }
  0x1b   :  { %p736_p10 = scmp.ne.s32.totalorder %s25_s19, %s735_s1  ;;  %p741_p12 = scmp.lt.s32.totalorder %s735_s1, %s735_s1 }
  0x1d   :  { %p742_p13 = por %p741_p12, %p740_p11 }
  0x1f   :  { %p743_p0 = pnand %p742_p13, %p736_p10 }
  0x21   :  { %746 = shalt.err (!%p743_p0)
}
  0x22   :  { %27 = dma.hbm_to_vmem [thread:$0]  %s951_s0, 128, %s25_s19, [#allocation3]  }
  0x23   :  { %s820_s25 = smov [#allocation7]   ;;  %s821_s27 = smov [#allocation10]  }
  0x24   :  { %s47_s26 = sshll.u32 %s820_s25, 4  ;;  %s75_s28 = sshll.u32 %s821_s27, 4  ;;  %s48_s26 = int_to_ptr.vmem [resolvable:$true] %s47_s26  ;;  %s76_s28 = int_to_ptr.vmem [resolvable:$true] %s75_s28 }
  0x25   :  { %s755_s29 = scalar_lea.vmem %s48_s26, 1024  ;;  %p760_p2 = scmp.lt.s32.totalorder %s48_s26, %s48_s26 }
  0x26   :  { %p756_p1 = scmp.ne.s32.totalorder %s48_s26, %s755_s29  ;;  %p761_p3 = scmp.lt.s32.totalorder %s755_s29, %s755_s29 }
  0x28   :  { %p762_p4 = por %p761_p3, %p760_p2 }
  0x2a   :  { %p763_p5 = pnand %p762_p4, %p756_p1 }
  0x2c   :  { %766 = shalt.err (!%p763_p5)
}
  0x2d   :  { %53 = dma.hbm_to_vmem [thread:$0]  %s954_s3, 1024, %s48_s26, [#allocation6], %s816_s12, %s816_s12, %s817_s13  }
  0x2e   :  { %s775_s0 = scalar_lea.vmem %s76_s28, 1024  ;;  %p780_p7 = scmp.lt.s32.totalorder %s76_s28, %s76_s28 }
  0x2f   :  { %p776_p6 = scmp.ne.s32.totalorder %s76_s28, %s775_s0  ;;  %p781_p8 = scmp.lt.s32.totalorder %s775_s0, %s775_s0 }
  0x31   :  { %p782_p9 = por %p781_p8, %p780_p7 }
  0x33   :  { %p783_p10 = pnand %p782_p9, %p776_p6 }
  0x35   :  { %786 = shalt.err (!%p783_p10)
}
  0x36   :  { %81 = dma.hbm_to_vmem [thread:$0]  %s958_s7, 1024, %s76_s28, [#allocation9], %s816_s12, %s816_s12, %s817_s13  }
  0x37   :  { %807 = dma.done.wait [#allocation3], 128  }
  0x38   :  { %808 = vsyncadd [#allocation3], 4294967168 }
  0x39   :  { %809 = dma.done.wait [#allocation6], 1152  }
  0x3a   :  { %810 = vsyncadd [#allocation6], 4294966144 }
  0x3b   :  { %811 = dma.done.wait [#allocation9], 2048  }
  0x3c   :  { %812 = vsyncadd [#allocation9], 4294965248  ;;  %vm120_vm0 = vcmask 1045504   ;;  %v822_v0 = vmov 0.0   ;;  %vm823_vm1 = vmmov 0   ;;  %vm121_vm2 = vcmask 1046528  }
  0x3d   :  { %585 = vmatprep.subr.bf16.mxu0 %v822_v0  ;;  %591 = vmatprep.subr.bf16.mxu1 %v822_v0  ;;  %v824_v1 = vmov 65535   ;;  %v662_v4 = vld [vmem:[#allocation5] sm:$0x7f]   ;;  %v100_v5 = vld [vmem:[#allocation2] sm:$0xff]  ;;  %vm116_vm3 = vcmask 105472   ;;  %v665_v10 = vld [vmem:[#allocation7 + $0x28] sm:$0xff]  }
  0x3e   :  { %587 = vmatprep.mubr.msk.bf16.mxu0 %vm823_vm1, %v822_v0  ;;  %607 = vmatprep.mubr.msk.bf16.mxu1 %vm823_vm1, %v822_v0  ;;  %v122_v2 = vsel %vm120_vm0, 4294967295, %v824_v1  ;;  %v663_v7 = vld [vmem:[#allocation7 + $0x38] sm:$0xff]   ;;  %v101_v8 = vpack.c.bf16 %v100_v5, %v100_v5  ;;  %v664_v9 = vld [vmem:[#allocation7 + $0x30] sm:$0xff]   ;;  %v666_v11 = vld [vmem:[#allocation7 + $0x20] sm:$0xff]   ;;  %s825_s16 = smov [#allocation11]   ;;  %vm507_vm4 = vcmask 97280  }
  0x3f   :  { %v123_v3 = vsel %vm121_vm2, %v122_v2, 0  ;;  %592 = vmatpush3.bf16.msra.mxu1 %v663_v7  ;;  %v667_v12 = vld [vmem:[#allocation7 + $0x18] sm:$0xff]   ;;  %v668_v13 = vld [vmem:[#allocation7 + $0x10] sm:$0xff]   ;;  %v669_v14 = vld [vmem:[#allocation7 + $0x8] sm:$0xff]   ;;  %s515_s17 = sshll.u32 %s825_s16, 4  ;;  %s516_s17 = int_to_ptr.vmem [resolvable:$true] %s515_s17 }
  0x40   :  { %v125_v6 = vand.u32 %v662_v4, %v123_v3  ;;  %593 = vmatprep.subr.bf16.mxu1 %v822_v0  ;;  %v670_v15 = vld [vmem:[#allocation7] sm:$0xff]   ;;  %v671_v16 = vld [vmem:[#allocation8 + $0x38] sm:$0xff]   ;;  %v672_v17 = vld [vmem:[#allocation8 + $0x30] sm:$0xff]   ;;  %p792_p12 = scmp.lt.s32.totalorder %s516_s17, %s516_s17 }
  0x41   :  { %v673_v18 = vld [vmem:[#allocation8 + $0x28] sm:$0xff]   ;;  %v674_v19 = vld [vmem:[#allocation8 + $0x20] sm:$0xff]   ;;  %v675_v20 = vld [vmem:[#allocation8 + $0x18] sm:$0xff]  }
  0x42   :  { %586 = vmatpush3.bf16.msra.mxu0 %v125_v6  ;;  %v676_v21 = vld [vmem:[#allocation8 + $0x10] sm:$0xff]   ;;  %v677_v30 = vld [vmem:[#allocation8 + $0x8] sm:$0xff]   ;;  %v678_v31 = vld [vmem:[#allocation8] sm:$0xff]  }
  0x43   :  { %611 = vmatprep.subr.bf16.mxu0 %v822_v0  ;;  %594 = vmatpush3.bf16.msra.mxu1 %v664_v9  ;;  %v526_v22 = vld [vmem:[%s953_s2] ss:$0 sm:$0xff]  ;;  %v679_v32 = vld [vmem:[#allocation10 + $0x38] sm:$0xff]   ;;  %v681_v34 = vld [vmem:[#allocation10 + $0x28] sm:$0xff]  }
  0x44   :  { %595 = vmatprep.subr.bf16.mxu1 %v822_v0  ;;  %v680_v33 = vld [vmem:[#allocation10 + $0x30] sm:$0xff]   ;;  %v682_v35 = vld [vmem:[#allocation10 + $0x20] sm:$0xff]   ;;  %v683_v36 = vld [vmem:[#allocation10 + $0x18] sm:$0xff]  }
  0x45   :  { %588 = vmatmul.mubr.msk.bf16.vlgmr.msra.gmra.mxu0 %vm116_vm3, %v101_v8  ;;  %v684_v37 = vld [vmem:[#allocation10 + $0x10] sm:$0xff]   ;;  %v685_v46 = vld [vmem:[#allocation10 + $0x8] sm:$0xff]   ;;  %v686_v47 = vld [vmem:[#allocation10] sm:$0xff]  }
  0x46   :  { %627 = vmatprep.mubr.msk.bf16.mxu0 %vm823_vm1, %v822_v0  ;;  %612 = vmatpush3.bf16.msra.mxu0 %v671_v16  ;;  %v529_v38 = vld [vmem:[%s955_s4] ss:$0 sm:$0xff] }
  0x47   :  { %596 = vmatpush3.bf16.msra.mxu1 %v665_v10  ;;  %613 = vmatprep.subr.bf16.mxu0 %v822_v0  ;;  %v538_v48 = vld [vmem:[%s957_s6] ss:$0 sm:$0xff]  ;;  %s787_s6 = scalar_lea.vmem %s516_s17, 128 }
  0x48   :  { %597 = vmatprep.subr.bf16.mxu1 %v822_v0  ;;  %v555_v56 = vld [vmem:[%s959_s8] ss:$0 sm:$0xff]  ;;  %p788_p11 = scmp.ne.s32.totalorder %s516_s17, %s787_s6  ;;  %p793_p13 = scmp.lt.s32.totalorder %s787_s6, %s787_s6 }
  0x4a   :  { %614 = vmatpush3.bf16.msra.mxu0 %v672_v17  ;;  %p794_p0 = por %p793_p13, %p792_p12 }
  0x4b   :  { %598 = vmatpush3.bf16.msra.mxu1 %v666_v11  ;;  %615 = vmatprep.subr.bf16.mxu0 %v822_v0 }
  0x4c   :  { %599 = vmatprep.subr.bf16.mxu1 %v822_v0  ;;  %p795_p1 = pnand %p794_p0, %p788_p11 }
  0x4e   :  { %616 = vmatpush3.bf16.msra.mxu0 %v673_v18 }
  0x4f   :  { %600 = vmatpush3.bf16.msra.mxu1 %v667_v12  ;;  %617 = vmatprep.subr.bf16.mxu0 %v822_v0 }
  0x50   :  { %601 = vmatprep.subr.bf16.mxu1 %v822_v0 }
  0x52   :  { %618 = vmatpush3.bf16.msra.mxu0 %v674_v19 }
  0x53   :  { %602 = vmatpush3.bf16.msra.mxu1 %v668_v13  ;;  %619 = vmatprep.subr.bf16.mxu0 %v822_v0 }
  0x54   :  { %603 = vmatprep.subr.bf16.mxu1 %v822_v0 }
  0x56   :  { %620 = vmatpush3.bf16.msra.mxu0 %v675_v20 }
  0x57   :  { %604 = vmatpush3.bf16.msra.mxu1 %v669_v14  ;;  %621 = vmatprep.subr.bf16.mxu0 %v822_v0 }
  0x58   :  { %605 = vmatprep.subr.bf16.mxu1 %v822_v0 }
  0x5a   :  { %622 = vmatpush3.bf16.msra.mxu0 %v676_v21 }
  0x5b   :  { %606 = vmatpush3.bf16.msra.mxu1 %v670_v15  ;;  %623 = vmatprep.subr.bf16.mxu0 %v822_v0 }
  0x5c   :  { %631 = vmatprep.subr.bf16.mxu1 %v822_v0 }
  0x5e   :  { %624 = vmatpush3.bf16.msra.mxu0 %v677_v30 }
  0x5f   :  { %625 = vmatprep.subr.bf16.mxu0 %v822_v0 }
  0x62   :  { %626 = vmatpush3.bf16.msra.mxu0 %v678_v31 }
 0x105   :  { %v161_v23 = vpop.f32.mrf.mxu0 }
 0x106   :  { %v162_v24 = vadd.f32 %v526_v22, %v161_v23 }
 0x107   :  { %v589_v25 = vpop.f32.mrf.mxu0 }
 0x108   :  { %v167_v26 = vmax.f32 %v162_v24, 0.0 }
 0x109   :  { %v164_v27 = vpop.f32.mrf.mxu0 }
 0x10a   :  { %v168_v28 = vpack.c.bf16 %v167_v26, %v167_v26 }
 0x10b   :  { %v590_v29 = vpop.f32.mrf.mxu0 }
 0x10c   :  { %608 = vmatmul.mubr.bf16.vlgmr.msra.gmra.mxu1 %v168_v28 }
 0x10d   :  { %647 = vmatprep.mubr.msk.bf16.mxu1 %vm823_vm1, %v822_v0  ;;  %632 = vmatpush3.bf16.msra.mxu1 %v679_v32 }
 0x10e   :  { %633 = vmatprep.subr.bf16.mxu1 %v822_v0 }
 0x111   :  { %634 = vmatpush3.bf16.msra.mxu1 %v680_v33 }
 0x112   :  { %635 = vmatprep.subr.bf16.mxu1 %v822_v0 }
 0x115   :  { %636 = vmatpush3.bf16.msra.mxu1 %v681_v34 }
 0x116   :  { %637 = vmatprep.subr.bf16.mxu1 %v822_v0 }
 0x119   :  { %638 = vmatpush3.bf16.msra.mxu1 %v682_v35 }
 0x11a   :  { %639 = vmatprep.subr.bf16.mxu1 %v822_v0 }
 0x11d   :  { %640 = vmatpush3.bf16.msra.mxu1 %v683_v36 }
 0x11e   :  { %641 = vmatprep.subr.bf16.mxu1 %v822_v0 }
 0x121   :  { %642 = vmatpush3.bf16.msra.mxu1 %v684_v37 }
 0x122   :  { %643 = vmatprep.subr.bf16.mxu1 %v822_v0 }
 0x125   :  { %644 = vmatpush3.bf16.msra.mxu1 %v685_v46 }
 0x126   :  { %645 = vmatprep.subr.bf16.mxu1 %v822_v0 }
 0x129   :  { %646 = vmatpush3.bf16.msra.mxu1 %v686_v47 }
 0x1cc   :  { %v274_v39 = vpop.f32.mrf.mxu1 }
 0x1cd   :  { %v275_v40 = vadd.f32 %v529_v38, %v274_v39 }
 0x1ce   :  { %v609_v41 = vpop.f32.mrf.mxu1 }
 0x1cf   :  { %v280_v42 = vmax.f32 %v275_v40, 0.0 }
 0x1d0   :  { %v277_v43 = vpop.f32.mrf.mxu1 }
 0x1d1   :  { %v281_v44 = vpack.c.bf16 %v280_v42, %v280_v42 }
 0x1d2   :  { %v610_v45 = vpop.f32.mrf.mxu1 }
 0x1d3   :  { %628 = vmatmul.mubr.bf16.vlgmr.msra.gmra.mxu0 %v281_v44 }
 0x293   :  { %v387_v49 = vpop.f32.mrf.mxu0 }
 0x294   :  { %v388_v50 = vadd.f32 %v538_v48, %v387_v49 }
 0x295   :  { %v629_v51 = vpop.f32.mrf.mxu0 }
 0x296   :  { %v393_v52 = vmax.f32 %v388_v50, 0.0 }
 0x297   :  { %v390_v53 = vpop.f32.mrf.mxu0 }
 0x298   :  { %v394_v54 = vpack.c.bf16 %v393_v52, %v393_v52 }
 0x299   :  { %v630_v55 = vpop.f32.mrf.mxu0 }
 0x29a   :  { %648 = vmatmul.mubr.bf16.vlgmr.msra.gmra.mxu1 %v394_v54 }
 0x35a   :  { %v493_v57 = vpop.f32.mrf.mxu1 }
 0x35b   :  { %v506_v58 = vadd.f32 %v555_v56, %v493_v57 }
 0x35c   :  { %v649_v59 = vpop.f32.mrf.mxu1 }
 0x35d   :  { %508 = vst.msk [vmem:[#allocation11] sm:$0xff] %vm507_vm4, %v506_v58 }
 0x35e   :  { %v496_v60 = vpop.f32.mrf.mxu1 }
 0x35f   :  { %798 = shalt.err (!%p795_p1)
}
 0x360   :  { %518 = dma.vmem_to_hbm [thread:$0]  %s516_s17, 128, %s960_s9, [#allocation4]   ;;  %v650_v61 = vpop.f32.mrf.mxu1 }
 0x361   :  { %813 = dma.done.wait [#allocation4], 128  }
 0x362   :  { %814 = vsyncadd [#allocation4], 4294967168 }
 0x363   :  { %522 = vsyncpa [#allocation3], 1 }
 0x364   :  { %523 = vsyncpa [#allocation6], 1 }
 0x365   :  { %524 = vsyncpa [#allocation9], 1 }
 0x366   :  { %525 = vsyncpa [#allocation4], 1 }

</bundles_post_ra>
